<compile_context>
chip_gen: v7x
topology: tpu7x:2x2x1
jax: 0.10.0
libtpu: 0.0.40
codegen_flags: <defaults>
</compile_context>

<pallas_src>
import functools

import jax
import jax.numpy as jnp
from jax import lax
from jax.experimental import pallas as pl
from jax.experimental.pallas import tpu as pltpu


def iblock_kernel(x_ref, w1_ref, w2_ref, s1_ref, bm1_ref, b2_ref, a_ref,
                  mof_ref, b3_ref, o_ref, buf_ref, *, wp):
    # x_ref  : (1, BC, Lp)   flat zero-padded images ("interior frame")
    # w*_ref : (3, 3, BC, BC) per-tap block-diagonal weights (BN scale folded)
    # s1_ref : (BC, 1)        bn1 scale
    # bm1_ref: (BC, Lp)       bn1 bias, pre-masked to 0 on the padding border
    # b2/b3  : (BC, 1)        folded bn2 / bn3 biases
    # a_ref  : (BC, 1)        PReLU slope
    # mof_ref: (1, Lp)        "output frame" validity mask (1 where h<H, w<W)
    # buf_ref: (BC, Lp + 2*wp + 2) scratch; tap k reads buf[:, s_k : s_k + Lp]
    Lp = x_ref.shape[2]
    rshift = wp + 1                      # output frame -> interior frame

    @pl.when(pl.program_id(0) == 0)
    def _init():
        # One-time init only (scratch persists across grid steps).  The math
        # below is masked such that correctness never depends on the tail.
        buf_ref[...] = jnp.zeros(buf_ref.shape, buf_ref.dtype)

    xp = x_ref[0].astype(jnp.float32)                      # (BC, Lp)

    # ---- bn1: scale + border-masked bias (conv1 padding stays exactly 0) ----
    buf_ref[:, :Lp] = xp * s1_ref[...] + bm1_ref[...]

    def conv3x3(w_ref):
        acc = None
        for kh in range(3):
            for kw in range(3):
                s = kh * wp + kw
                t = jnp.dot(w_ref[kh, kw], buf_ref[:, s:s + Lp],
                            preferred_element_type=jnp.float32)
                acc = t if acc is None else acc + t
        return acc                                         # "output frame"

    # ---- conv1 (bn2 scale folded) -> bn2 bias -> PReLU ----
    y = conv3x3(w1_ref) + b2_ref[...]
    y = jnp.where(y >= 0.0, y, a_ref[...] * y)
    # Re-frame into interior coordinates by storing at lane offset wp+1 and
    # zero everything outside the valid HxW window so conv2 sees zero padding.
    buf_ref[:, rshift:rshift + Lp] = jnp.where(mof_ref[...] > 0.5, y, 0.0)

    # ---- conv2 (bn3 scale folded) -> bn3 bias -> residual ----
    y = conv3x3(w2_ref) + b3_ref[...]
    buf_ref[:, rshift:rshift + Lp] = y                     # back to interior frame
    o_ref[0] = (buf_ref[:, :Lp] + xp).astype(o_ref.dtype)  # + identity


def ibasic_block_pallas(x_nchw, params, *, batch_tile=None):
    """x_nchw: (N, C, H, W) float32.  Returns (N, C, H, W)."""
    N, C, H, W = x_nchw.shape
    Hp, Wp = H + 2, W + 2
    Lp = Hp * Wp
    eps = 1e-5

    # Pack several images into the sublane axis when C is small so the (8,128)
    # vreg height is filled and per-grid-step overhead is amortized.
    if batch_tile is None:
        batch_tile = max(1, 8 // C) if C < 8 else 1
        while N % batch_tile:
            batch_tile -= 1
    B = batch_tile
    G = N // B
    BC = B * C

    # ---- fold BatchNorm (inference: running stats) ----
    def fold(g, b, m, v):
        s = g / jnp.sqrt(v + eps)
        return s, b - m * s

    s1, b1f = fold(params['g1'], params['b1'], params['m1'], params['v1'])
    s2, b2f = fold(params['g2'], params['b2'], params['m2'], params['v2'])
    s3, b3f = fold(params['g3'], params['b3'], params['m3'], params['v3'])

    # Fold bn2 / bn3 scales into the conv output channels (exact).  Biases
    # stay separate because zero padding is applied between bias and conv.
    w1 = params['w1'] * s2[:, None, None, None]            # (Co, Ci, 3, 3)
    w2 = params['w2'] * s3[:, None, None, None]

    # Per-tap (Co, Ci) matrices, made block-diagonal over the batch tile.
    eye_b = jnp.eye(B, dtype=jnp.float32)

    def prep_w(w):
        wt = jnp.transpose(w, (2, 3, 0, 1))                # (3, 3, Co, Ci)
        wb = jnp.einsum('bd,hwoi->hwbodi', eye_b, wt)
        return wb.reshape(3, 3, BC, BC).astype(jnp.float32)

    w1b, w2b = prep_w(w1), prep_w(w2)

    # Masks over the flat padded frame.
    ii = jnp.arange(Lp, dtype=jnp.int32) // Wp
    jj = jnp.arange(Lp, dtype=jnp.int32) % Wp
    m_if = ((ii >= 1) & (ii <= H) & (jj >= 1) & (jj <= W)).astype(jnp.float32)
    m_of = ((ii < H) & (jj < W)).astype(jnp.float32)[None, :]       # (1, Lp)

    tile_col = lambda v: jnp.tile(v, B).reshape(BC, 1).astype(jnp.float32)
    s1c = tile_col(s1)
    bm1 = tile_col(b1f) * m_if[None, :]                    # (BC, Lp), 0 border
    b2c, b3c = tile_col(b2f), tile_col(b3f)
    alpha = tile_col(params['alpha'])

    # Zero-pad spatially, flatten, fold the batch tile into the channel axis.
    xp = jnp.pad(x_nchw, ((0, 0), (0, 0), (1, 1), (1, 1)))
    xp = xp.reshape(G, BC, Lp)

    full = lambda a: pl.BlockSpec(a.shape, lambda g, nd=a.ndim: (0,) * nd)
    img = pl.BlockSpec((1, BC, Lp), lambda g: (g, 0, 0))

    out = pl.pallas_call(
        functools.partial(iblock_kernel, wp=Wp),
        out_shape=jax.ShapeDtypeStruct((G, BC, Lp), x_nchw.dtype),
        grid_spec=pltpu.PrefetchScalarGridSpec(
            num_scalar_prefetch=0,
            grid=(G,),
            in_specs=[img, full(w1b), full(w2b), full(s1c), full(bm1),
                      full(b2c), full(alpha), full(m_of), full(b3c)],
            out_specs=img,
            scratch_shapes=[pltpu.VMEM((BC, Lp + 2 * Wp + 2), jnp.float32)],
        ),
        compiler_params=pltpu.CompilerParams(
            dimension_semantics=("parallel",)),
    )(xp, w1b, w2b, s1c, bm1, b2c, alpha, m_of, b3c)

    # Back to NCHW; kernel output is in the padded "interior frame"
    # (image at rows/cols 1..H / 1..W), so drop the halo.
    out = out.reshape(N, C, Hp, Wp)[:, :, 1:H + 1, 1:W + 1]
    return out


# ------------------------- pure-JAX reference ------------------------------
def ibasic_block_ref(x, p):
    eps = 1e-5

    def bn(x, g, b, m, v):
        g, b, m, v = (t[None, :, None, None] for t in (g, b, m, v))
        return (x - m) / jnp.sqrt(v + eps) * g + b

    def conv(x, w):
        return lax.conv_general_dilated(
            x, w, window_strides=(1, 1), padding=((1, 1), (1, 1)),
            dimension_numbers=('NCHW', 'OIHW', 'NCHW'))

    out = bn(x, p['g1'], p['b1'], p['m1'], p['v1'])
    out = conv(out, p['w1'])
    out = bn(out, p['g2'], p['b2'], p['m2'], p['v2'])
    a = p['alpha'][None, :, None, None]
    out = jnp.where(out >= 0, out, a * out)
    out = conv(out, p['w2'])
    out = bn(out, p['g3'], p['b3'], p['m3'], p['v3'])
    return out + x


def make_params(key, C):
    ks = jax.random.split(key, 12)
    p = {
        'w1': jax.random.normal(ks[0], (C, C, 3, 3), jnp.float32) * 0.1,
        'w2': jax.random.normal(ks[1], (C, C, 3, 3), jnp.float32) * 0.1,
        'alpha': jax.random.uniform(ks[2], (C,), jnp.float32, 0.1, 0.4),
    }
    for i, tag in enumerate(('1', '2', '3')):
        p['g' + tag] = 1.0 + 0.1 * jax.random.normal(ks[3 + 3 * i], (C,), jnp.float32)
        p['b' + tag] = 0.1 * jax.random.normal(ks[4 + 3 * i], (C,), jnp.float32)
        p['m' + tag] = 0.1 * jax.random.normal(ks[5 + 3 * i], (C,), jnp.float32)
        p['v' + tag] = 1.0 + 0.1 * jax.random.uniform(ks[3 + i], (C,), jnp.float32)
    return p


if __name__ == "__main__":
    key = jax.random.PRNGKey(0)
    kx, kp = jax.random.split(key)

    N, C, H, W = 2, 4, 16, 16                 # inplanes == planes == 4, stride=1
    x = jax.random.normal(kx, (N, C, H, W), jnp.float32)
    params = make_params(kp, C)

    out = jax.block_until_ready(ibasic_block_pallas(x, params))
    ref = jax.block_until_ready(ibasic_block_ref(x, params))

    assert out.shape == ref.shape == (N, C, H, W)
    err = jnp.max(jnp.abs(out - ref))
    assert jnp.allclose(out, ref, rtol=1e-2, atol=1e-2), f"max abs err {err}"

    print("KERNEL_OK")
</pallas_src>

<mosaic_0001>
module attributes {stable_mosaic.version = 11 : i64} {
  func.func @iblock_kernel(%arg0: i32, %arg1: memref<1x8x324xf32, #tpu.memory_space<vmem>>, %arg2: memref<3x3x8x8xf32, #tpu.memory_space<vmem>>, %arg3: memref<3x3x8x8xf32, #tpu.memory_space<vmem>>, %arg4: memref<8x1xf32, #tpu.memory_space<vmem>>, %arg5: memref<8x324xf32, #tpu.memory_space<vmem>>, %arg6: memref<8x1xf32, #tpu.memory_space<vmem>>, %arg7: memref<8x1xf32, #tpu.memory_space<vmem>>, %arg8: memref<1x324xf32, #tpu.memory_space<vmem>>, %arg9: memref<8x1xf32, #tpu.memory_space<vmem>>, %arg10: memref<1x8x324xf32, #tpu.memory_space<vmem>>, %arg11: memref<8x362xf32, #tpu.memory_space<vmem>>) attributes {dimension_semantics = [#tpu.dimension_semantics<parallel>], iteration_bounds = array<i64: 1>, scalar_prefetch = 0 : i64, scratch_operands = 1 : i64, tpu.core_type = #tpu.core_type<tc>, window_params = [{transform_indices = @transform_0, window_bounds = array<i64: 1, 8, 324>}, {pipeline_mode = #tpu.pipeline_mode<synchronous>, transform_indices = @transform_1, window_bounds = array<i64: 3, 3, 8, 8>}, {pipeline_mode = #tpu.pipeline_mode<synchronous>, transform_indices = @transform_2, window_bounds = array<i64: 3, 3, 8, 8>}, {pipeline_mode = #tpu.pipeline_mode<synchronous>, transform_indices = @transform_3, window_bounds = array<i64: 8, 1>}, {pipeline_mode = #tpu.pipeline_mode<synchronous>, transform_indices = @transform_4, window_bounds = array<i64: 8, 324>}, {pipeline_mode = #tpu.pipeline_mode<synchronous>, transform_indices = @transform_5, window_bounds = array<i64: 8, 1>}, {pipeline_mode = #tpu.pipeline_mode<synchronous>, transform_indices = @transform_6, window_bounds = array<i64: 8, 1>}, {pipeline_mode = #tpu.pipeline_mode<synchronous>, transform_indices = @transform_7, window_bounds = array<i64: 1, 324>}, {pipeline_mode = #tpu.pipeline_mode<synchronous>, transform_indices = @transform_8, window_bounds = array<i64: 8, 1>}, {transform_indices = @transform_9, window_bounds = array<i64: 1, 8, 324>}]} {
    %c0_i32 = arith.constant 0 : i32
    %0 = arith.cmpi eq, %arg0, %c0_i32 : i32
    %1 = arith.extui %0 : i1 to i32
    %c0_i32_0 = arith.constant 0 : i32
    %2 = arith.cmpi ne, %1, %c0_i32_0 : i32
    scf.if %2 {
      %cst_146 = arith.constant 0.000000e+00 : f32
      %125 = vector.broadcast %cst_146 : f32 to vector<8x362xf32>
      %c0_147 = arith.constant 0 : index
      %c0_148 = arith.constant 0 : index
      %126 = vector.load %arg11[%c0_147, %c0_148] : memref<8x362xf32, #tpu.memory_space<vmem>>, vector<8x362xf32>
      tpu.vector_store %arg11[%c0_147, %c0_148], %125 {strides = array<i32>} : memref<8x362xf32, #tpu.memory_space<vmem>>, vector<8x362xf32>,
    } else {
    }
    %c0 = arith.constant 0 : index
    %c0_1 = arith.constant 0 : index
    %c0_2 = arith.constant 0 : index
    %3 = vector.load %arg1[%c0, %c0_1, %c0_2] : memref<1x8x324xf32, #tpu.memory_space<vmem>>, vector<1x8x324xf32>
    %4 = vector.shape_cast %3 : vector<1x8x324xf32> to vector<8x324xf32>
    %c0_3 = arith.constant 0 : index
    %c0_4 = arith.constant 0 : index
    %5 = vector.load %arg4[%c0_3, %c0_4] : memref<8x1xf32, #tpu.memory_space<vmem>>, vector<8x1xf32>
    %6 = vector.broadcast %5 : vector<8x1xf32> to vector<8x324xf32>
    %7 = arith.mulf %4, %6 : vector<8x324xf32>
    %c0_5 = arith.constant 0 : index
    %c0_6 = arith.constant 0 : index
    %8 = vector.load %arg5[%c0_5, %c0_6] : memref<8x324xf32, #tpu.memory_space<vmem>>, vector<8x324xf32>
    %9 = arith.addf %7, %8 : vector<8x324xf32>
    %c0_7 = arith.constant 0 : index
    %c0_8 = arith.constant 0 : index
    %10 = vector.load %arg11[%c0_7, %c0_8] : memref<8x362xf32, #tpu.memory_space<vmem>>, vector<8x324xf32>
    tpu.vector_store %arg11[%c0_7, %c0_8], %9 {strides = array<i32>} : memref<8x362xf32, #tpu.memory_space<vmem>>, vector<8x324xf32>,
    %c0_9 = arith.constant 0 : index
    %c0_10 = arith.constant 0 : index
    %c0_11 = arith.constant 0 : index
    %c0_12 = arith.constant 0 : index
    %11 = vector.load %arg2[%c0_9, %c0_10, %c0_11, %c0_12] : memref<3x3x8x8xf32, #tpu.memory_space<vmem>>, vector<1x1x8x8xf32>
    %12 = vector.shape_cast %11 : vector<1x1x8x8xf32> to vector<8x8xf32>
    %c0_13 = arith.constant 0 : index
    %c0_14 = arith.constant 0 : index
    %13 = vector.load %arg11[%c0_13, %c0_14] : memref<8x362xf32, #tpu.memory_space<vmem>>, vector<8x324xf32>
    %cst = arith.constant dense<0.000000e+00> : vector<8x324xf32>
    %14 = tpu.matmul %12, %13, %cst {dimension_numbers = #tpu.dot_dimension_numbers<[1], [0], [0], [1], [0, 0, 1, 1], [], []>} : vector<8x8xf32>, vector<8x324xf32>, vector<8x324xf32> -> vector<8x324xf32>
    %c0_15 = arith.constant 0 : index
    %c1 = arith.constant 1 : index
    %c0_16 = arith.constant 0 : index
    %c0_17 = arith.constant 0 : index
    %15 = vector.load %arg2[%c0_15, %c1, %c0_16, %c0_17] : memref<3x3x8x8xf32, #tpu.memory_space<vmem>>, vector<1x1x8x8xf32>
    %16 = vector.shape_cast %15 : vector<1x1x8x8xf32> to vector<8x8xf32>
    %c0_18 = arith.constant 0 : index
    %c1_19 = arith.constant 1 : index
    %17 = vector.load %arg11[%c0_18, %c1_19] : memref<8x362xf32, #tpu.memory_space<vmem>>, vector<8x324xf32>
    %cst_20 = arith.constant dense<0.000000e+00> : vector<8x324xf32>
    %18 = tpu.matmul %16, %17, %cst_20 {dimension_numbers = #tpu.dot_dimension_numbers<[1], [0], [0], [1], [0, 0, 1, 1], [], []>} : vector<8x8xf32>, vector<8x324xf32>, vector<8x324xf32> -> vector<8x324xf32>
    %19 = arith.addf %14, %18 : vector<8x324xf32>
    %c0_21 = arith.constant 0 : index
    %c2 = arith.constant 2 : index
    %c0_22 = arith.constant 0 : index
    %c0_23 = arith.constant 0 : index
    %20 = vector.load %arg2[%c0_21, %c2, %c0_22, %c0_23] : memref<3x3x8x8xf32, #tpu.memory_space<vmem>>, vector<1x1x8x8xf32>
    %21 = vector.shape_cast %20 : vector<1x1x8x8xf32> to vector<8x8xf32>
    %c0_24 = arith.constant 0 : index
    %c2_25 = arith.constant 2 : index
    %22 = vector.load %arg11[%c0_24, %c2_25] : memref<8x362xf32, #tpu.memory_space<vmem>>, vector<8x324xf32>
    %cst_26 = arith.constant dense<0.000000e+00> : vector<8x324xf32>
    %23 = tpu.matmul %21, %22, %cst_26 {dimension_numbers = #tpu.dot_dimension_numbers<[1], [0], [0], [1], [0, 0, 1, 1], [], []>} : vector<8x8xf32>, vector<8x324xf32>, vector<8x324xf32> -> vector<8x324xf32>
    %24 = arith.addf %19, %23 : vector<8x324xf32>
    %c1_27 = arith.constant 1 : index
    %c0_28 = arith.constant 0 : index
    %c0_29 = arith.constant 0 : index
    %c0_30 = arith.constant 0 : index
    %25 = vector.load %arg2[%c1_27, %c0_28, %c0_29, %c0_30] : memref<3x3x8x8xf32, #tpu.memory_space<vmem>>, vector<1x1x8x8xf32>
    %26 = vector.shape_cast %25 : vector<1x1x8x8xf32> to vector<8x8xf32>
    %c0_31 = arith.constant 0 : index
    %c18 = arith.constant 18 : index
    %27 = vector.load %arg11[%c0_31, %c18] : memref<8x362xf32, #tpu.memory_space<vmem>>, vector<8x324xf32>
    %cst_32 = arith.constant dense<0.000000e+00> : vector<8x324xf32>
    %28 = tpu.matmul %26, %27, %cst_32 {dimension_numbers = #tpu.dot_dimension_numbers<[1], [0], [0], [1], [0, 0, 1, 1], [], []>} : vector<8x8xf32>, vector<8x324xf32>, vector<8x324xf32> -> vector<8x324xf32>
    %29 = arith.addf %24, %28 : vector<8x324xf32>
    %c1_33 = arith.constant 1 : index
    %c1_34 = arith.constant 1 : index
    %c0_35 = arith.constant 0 : index
    %c0_36 = arith.constant 0 : index
    %30 = vector.load %arg2[%c1_33, %c1_34, %c0_35, %c0_36] : memref<3x3x8x8xf32, #tpu.memory_space<vmem>>, vector<1x1x8x8xf32>
    %31 = vector.shape_cast %30 : vector<1x1x8x8xf32> to vector<8x8xf32>
    %c0_37 = arith.constant 0 : index
    %c19 = arith.constant 19 : index
    %32 = vector.load %arg11[%c0_37, %c19] : memref<8x362xf32, #tpu.memory_space<vmem>>, vector<8x324xf32>
    %cst_38 = arith.constant dense<0.000000e+00> : vector<8x324xf32>
    %33 = tpu.matmul %31, %32, %cst_38 {dimension_numbers = #tpu.dot_dimension_numbers<[1], [0], [0], [1], [0, 0, 1, 1], [], []>} : vector<8x8xf32>, vector<8x324xf32>, vector<8x324xf32> -> vector<8x324xf32>
    %34 = arith.addf %29, %33 : vector<8x324xf32>
    %c1_39 = arith.constant 1 : index
    %c2_40 = arith.constant 2 : index
    %c0_41 = arith.constant 0 : index
    %c0_42 = arith.constant 0 : index
    %35 = vector.load %arg2[%c1_39, %c2_40, %c0_41, %c0_42] : memref<3x3x8x8xf32, #tpu.memory_space<vmem>>, vector<1x1x8x8xf32>
    %36 = vector.shape_cast %35 : vector<1x1x8x8xf32> to vector<8x8xf32>
    %c0_43 = arith.constant 0 : index
    %c20 = arith.constant 20 : index
    %37 = vector.load %arg11[%c0_43, %c20] : memref<8x362xf32, #tpu.memory_space<vmem>>, vector<8x324xf32>
    %cst_44 = arith.constant dense<0.000000e+00> : vector<8x324xf32>
    %38 = tpu.matmul %36, %37, %cst_44 {dimension_numbers = #tpu.dot_dimension_numbers<[1], [0], [0], [1], [0, 0, 1, 1], [], []>} : vector<8x8xf32>, vector<8x324xf32>, vector<8x324xf32> -> vector<8x324xf32>
    %39 = arith.addf %34, %38 : vector<8x324xf32>
    %c2_45 = arith.constant 2 : index
    %c0_46 = arith.constant 0 : index
    %c0_47 = arith.constant 0 : index
    %c0_48 = arith.constant 0 : index
    %40 = vector.load %arg2[%c2_45, %c0_46, %c0_47, %c0_48] : memref<3x3x8x8xf32, #tpu.memory_space<vmem>>, vector<1x1x8x8xf32>
    %41 = vector.shape_cast %40 : vector<1x1x8x8xf32> to vector<8x8xf32>
    %c0_49 = arith.constant 0 : index
    %c36 = arith.constant 36 : index
    %42 = vector.load %arg11[%c0_49, %c36] : memref<8x362xf32, #tpu.memory_space<vmem>>, vector<8x324xf32>
    %cst_50 = arith.constant dense<0.000000e+00> : vector<8x324xf32>
    %43 = tpu.matmul %41, %42, %cst_50 {dimension_numbers = #tpu.dot_dimension_numbers<[1], [0], [0], [1], [0, 0, 1, 1], [], []>} : vector<8x8xf32>, vector<8x324xf32>, vector<8x324xf32> -> vector<8x324xf32>
    %44 = arith.addf %39, %43 : vector<8x324xf32>
    %c2_51 = arith.constant 2 : index
    %c1_52 = arith.constant 1 : index
    %c0_53 = arith.constant 0 : index
    %c0_54 = arith.constant 0 : index
    %45 = vector.load %arg2[%c2_51, %c1_52, %c0_53, %c0_54] : memref<3x3x8x8xf32, #tpu.memory_space<vmem>>, vector<1x1x8x8xf32>
    %46 = vector.shape_cast %45 : vector<1x1x8x8xf32> to vector<8x8xf32>
    %c0_55 = arith.constant 0 : index
    %c37 = arith.constant 37 : index
    %47 = vector.load %arg11[%c0_55, %c37] : memref<8x362xf32, #tpu.memory_space<vmem>>, vector<8x324xf32>
    %cst_56 = arith.constant dense<0.000000e+00> : vector<8x324xf32>
    %48 = tpu.matmul %46, %47, %cst_56 {dimension_numbers = #tpu.dot_dimension_numbers<[1], [0], [0], [1], [0, 0, 1, 1], [], []>} : vector<8x8xf32>, vector<8x324xf32>, vector<8x324xf32> -> vector<8x324xf32>
    %49 = arith.addf %44, %48 : vector<8x324xf32>
    %c2_57 = arith.constant 2 : index
    %c2_58 = arith.constant 2 : index
    %c0_59 = arith.constant 0 : index
    %c0_60 = arith.constant 0 : index
    %50 = vector.load %arg2[%c2_57, %c2_58, %c0_59, %c0_60] : memref<3x3x8x8xf32, #tpu.memory_space<vmem>>, vector<1x1x8x8xf32>
    %51 = vector.shape_cast %50 : vector<1x1x8x8xf32> to vector<8x8xf32>
    %c0_61 = arith.constant 0 : index
    %c38 = arith.constant 38 : index
    %52 = vector.load %arg11[%c0_61, %c38] : memref<8x362xf32, #tpu.memory_space<vmem>>, vector<8x324xf32>
    %cst_62 = arith.constant dense<0.000000e+00> : vector<8x324xf32>
    %53 = tpu.matmul %51, %52, %cst_62 {dimension_numbers = #tpu.dot_dimension_numbers<[1], [0], [0], [1], [0, 0, 1, 1], [], []>} : vector<8x8xf32>, vector<8x324xf32>, vector<8x324xf32> -> vector<8x324xf32>
    %54 = arith.addf %49, %53 : vector<8x324xf32>
    %c0_63 = arith.constant 0 : index
    %c0_64 = arith.constant 0 : index
    %55 = vector.load %arg6[%c0_63, %c0_64] : memref<8x1xf32, #tpu.memory_space<vmem>>, vector<8x1xf32>
    %56 = vector.broadcast %55 : vector<8x1xf32> to vector<8x324xf32>
    %57 = arith.addf %54, %56 : vector<8x324xf32>
    %cst_65 = arith.constant 0.000000e+00 : f32
    %58 = vector.broadcast %cst_65 : f32 to vector<8x324xf32>
    %59 = arith.cmpf oge, %57, %58 : vector<8x324xf32>
    %c0_66 = arith.constant 0 : index
    %c0_67 = arith.constant 0 : index
    %60 = vector.load %arg7[%c0_66, %c0_67] : memref<8x1xf32, #tpu.memory_space<vmem>>, vector<8x1xf32>
    %61 = vector.broadcast %60 : vector<8x1xf32> to vector<8x324xf32>
    %62 = arith.mulf %61, %57 : vector<8x324xf32>
    %63 = arith.select %59, %57, %62 : vector<8x324xi1>, vector<8x324xf32>
    %c0_68 = arith.constant 0 : index
    %c0_69 = arith.constant 0 : index
    %64 = vector.load %arg8[%c0_68, %c0_69] : memref<1x324xf32, #tpu.memory_space<vmem>>, vector<1x324xf32>
    %cst_70 = arith.constant 5.000000e-01 : f32
    %65 = vector.broadcast %cst_70 : f32 to vector<1x324xf32>
    %66 = arith.cmpf ogt, %64, %65 : vector<1x324xf32>
    %cst_71 = arith.constant 0.000000e+00 : f32
    %67 = vector.shape_cast %66 : vector<1x324xi1> to vector<1x324xi1>
    %68 = vector.broadcast %67 : vector<1x324xi1> to vector<8x324xi1>
    %69 = vector.broadcast %cst_71 : f32 to vector<8x324xf32>
    %70 = arith.select %68, %63, %69 : vector<8x324xi1>, vector<8x324xf32>
    %c0_72 = arith.constant 0 : index
    %c19_73 = arith.constant 19 : index
    %71 = vector.load %arg11[%c0_72, %c19_73] : memref<8x362xf32, #tpu.memory_space<vmem>>, vector<8x324xf32>
    tpu.vector_store %arg11[%c0_72, %c19_73], %70 {strides = array<i32>} : memref<8x362xf32, #tpu.memory_space<vmem>>, vector<8x324xf32>,
    %c0_74 = arith.constant 0 : index
    %c0_75 = arith.constant 0 : index
    %c0_76 = arith.constant 0 : index
    %c0_77 = arith.constant 0 : index
    %72 = vector.load %arg3[%c0_74, %c0_75, %c0_76, %c0_77] : memref<3x3x8x8xf32, #tpu.memory_space<vmem>>, vector<1x1x8x8xf32>
    %73 = vector.shape_cast %72 : vector<1x1x8x8xf32> to vector<8x8xf32>
    %c0_78 = arith.constant 0 : index
    %c0_79 = arith.constant 0 : index
    %74 = vector.load %arg11[%c0_78, %c0_79] : memref<8x362xf32, #tpu.memory_space<vmem>>, vector<8x324xf32>
    %cst_80 = arith.constant dense<0.000000e+00> : vector<8x324xf32>
    %75 = tpu.matmul %73, %74, %cst_80 {dimension_numbers = #tpu.dot_dimension_numbers<[1], [0], [0], [1], [0, 0, 1, 1], [], []>} : vector<8x8xf32>, vector<8x324xf32>, vector<8x324xf32> -> vector<8x324xf32>
    %c0_81 = arith.constant 0 : index
    %c1_82 = arith.constant 1 : index
    %c0_83 = arith.constant 0 : index
    %c0_84 = arith.constant 0 : index
    %76 = vector.load %arg3[%c0_81, %c1_82, %c0_83, %c0_84] : memref<3x3x8x8xf32, #tpu.memory_space<vmem>>, vector<1x1x8x8xf32>
    %77 = vector.shape_cast %76 : vector<1x1x8x8xf32> to vector<8x8xf32>
    %c0_85 = arith.constant 0 : index
    %c1_86 = arith.constant 1 : index
    %78 = vector.load %arg11[%c0_85, %c1_86] : memref<8x362xf32, #tpu.memory_space<vmem>>, vector<8x324xf32>
    %cst_87 = arith.constant dense<0.000000e+00> : vector<8x324xf32>
    %79 = tpu.matmul %77, %78, %cst_87 {dimension_numbers = #tpu.dot_dimension_numbers<[1], [0], [0], [1], [0, 0, 1, 1], [], []>} : vector<8x8xf32>, vector<8x324xf32>, vector<8x324xf32> -> vector<8x324xf32>
    %80 = arith.addf %75, %79 : vector<8x324xf32>
    %c0_88 = arith.constant 0 : index
    %c2_89 = arith.constant 2 : index
    %c0_90 = arith.constant 0 : index
    %c0_91 = arith.constant 0 : index
    %81 = vector.load %arg3[%c0_88, %c2_89, %c0_90, %c0_91] : memref<3x3x8x8xf32, #tpu.memory_space<vmem>>, vector<1x1x8x8xf32>
    %82 = vector.shape_cast %81 : vector<1x1x8x8xf32> to vector<8x8xf32>
    %c0_92 = arith.constant 0 : index
    %c2_93 = arith.constant 2 : index
    %83 = vector.load %arg11[%c0_92, %c2_93] : memref<8x362xf32, #tpu.memory_space<vmem>>, vector<8x324xf32>
    %cst_94 = arith.constant dense<0.000000e+00> : vector<8x324xf32>
    %84 = tpu.matmul %82, %83, %cst_94 {dimension_numbers = #tpu.dot_dimension_numbers<[1], [0], [0], [1], [0, 0, 1, 1], [], []>} : vector<8x8xf32>, vector<8x324xf32>, vector<8x324xf32> -> vector<8x324xf32>
    %85 = arith.addf %80, %84 : vector<8x324xf32>
    %c1_95 = arith.constant 1 : index
    %c0_96 = arith.constant 0 : index
    %c0_97 = arith.constant 0 : index
    %c0_98 = arith.constant 0 : index
    %86 = vector.load %arg3[%c1_95, %c0_96, %c0_97, %c0_98] : memref<3x3x8x8xf32, #tpu.memory_space<vmem>>, vector<1x1x8x8xf32>
    %87 = vector.shape_cast %86 : vector<1x1x8x8xf32> to vector<8x8xf32>
    %c0_99 = arith.constant 0 : index
    %c18_100 = arith.constant 18 : index
    %88 = vector.load %arg11[%c0_99, %c18_100] : memref<8x362xf32, #tpu.memory_space<vmem>>, vector<8x324xf32>
    %cst_101 = arith.constant dense<0.000000e+00> : vector<8x324xf32>
    %89 = tpu.matmul %87, %88, %cst_101 {dimension_numbers = #tpu.dot_dimension_numbers<[1], [0], [0], [1], [0, 0, 1, 1], [], []>} : vector<8x8xf32>, vector<8x324xf32>, vector<8x324xf32> -> vector<8x324xf32>
    %90 = arith.addf %85, %89 : vector<8x324xf32>
    %c1_102 = arith.constant 1 : index
    %c1_103 = arith.constant 1 : index
    %c0_104 = arith.constant 0 : index
    %c0_105 = arith.constant 0 : index
    %91 = vector.load %arg3[%c1_102, %c1_103, %c0_104, %c0_105] : memref<3x3x8x8xf32, #tpu.memory_space<vmem>>, vector<1x1x8x8xf32>
    %92 = vector.shape_cast %91 : vector<1x1x8x8xf32> to vector<8x8xf32>
    %c0_106 = arith.constant 0 : index
    %c19_107 = arith.constant 19 : index
    %93 = vector.load %arg11[%c0_106, %c19_107] : memref<8x362xf32, #tpu.memory_space<vmem>>, vector<8x324xf32>
    %cst_108 = arith.constant dense<0.000000e+00> : vector<8x324xf32>
    %94 = tpu.matmul %92, %93, %cst_108 {dimension_numbers = #tpu.dot_dimension_numbers<[1], [0], [0], [1], [0, 0, 1, 1], [], []>} : vector<8x8xf32>, vector<8x324xf32>, vector<8x324xf32> -> vector<8x324xf32>
    %95 = arith.addf %90, %94 : vector<8x324xf32>
    %c1_109 = arith.constant 1 : index
    %c2_110 = arith.constant 2 : index
    %c0_111 = arith.constant 0 : index
    %c0_112 = arith.constant 0 : index
    %96 = vector.load %arg3[%c1_109, %c2_110, %c0_111, %c0_112] : memref<3x3x8x8xf32, #tpu.memory_space<vmem>>, vector<1x1x8x8xf32>
    %97 = vector.shape_cast %96 : vector<1x1x8x8xf32> to vector<8x8xf32>
    %c0_113 = arith.constant 0 : index
    %c20_114 = arith.constant 20 : index
    %98 = vector.load %arg11[%c0_113, %c20_114] : memref<8x362xf32, #tpu.memory_space<vmem>>, vector<8x324xf32>
    %cst_115 = arith.constant dense<0.000000e+00> : vector<8x324xf32>
    %99 = tpu.matmul %97, %98, %cst_115 {dimension_numbers = #tpu.dot_dimension_numbers<[1], [0], [0], [1], [0, 0, 1, 1], [], []>} : vector<8x8xf32>, vector<8x324xf32>, vector<8x324xf32> -> vector<8x324xf32>
    %100 = arith.addf %95, %99 : vector<8x324xf32>
    %c2_116 = arith.constant 2 : index
    %c0_117 = arith.constant 0 : index
    %c0_118 = arith.constant 0 : index
    %c0_119 = arith.constant 0 : index
    %101 = vector.load %arg3[%c2_116, %c0_117, %c0_118, %c0_119] : memref<3x3x8x8xf32, #tpu.memory_space<vmem>>, vector<1x1x8x8xf32>
    %102 = vector.shape_cast %101 : vector<1x1x8x8xf32> to vector<8x8xf32>
    %c0_120 = arith.constant 0 : index
    %c36_121 = arith.constant 36 : index
    %103 = vector.load %arg11[%c0_120, %c36_121] : memref<8x362xf32, #tpu.memory_space<vmem>>, vector<8x324xf32>
    %cst_122 = arith.constant dense<0.000000e+00> : vector<8x324xf32>
    %104 = tpu.matmul %102, %103, %cst_122 {dimension_numbers = #tpu.dot_dimension_numbers<[1], [0], [0], [1], [0, 0, 1, 1], [], []>} : vector<8x8xf32>, vector<8x324xf32>, vector<8x324xf32> -> vector<8x324xf32>
    %105 = arith.addf %100, %104 : vector<8x324xf32>
    %c2_123 = arith.constant 2 : index
    %c1_124 = arith.constant 1 : index
    %c0_125 = arith.constant 0 : index
    %c0_126 = arith.constant 0 : index
    %106 = vector.load %arg3[%c2_123, %c1_124, %c0_125, %c0_126] : memref<3x3x8x8xf32, #tpu.memory_space<vmem>>, vector<1x1x8x8xf32>
    %107 = vector.shape_cast %106 : vector<1x1x8x8xf32> to vector<8x8xf32>
    %c0_127 = arith.constant 0 : index
    %c37_128 = arith.constant 37 : index
    %108 = vector.load %arg11[%c0_127, %c37_128] : memref<8x362xf32, #tpu.memory_space<vmem>>, vector<8x324xf32>
    %cst_129 = arith.constant dense<0.000000e+00> : vector<8x324xf32>
    %109 = tpu.matmul %107, %108, %cst_129 {dimension_numbers = #tpu.dot_dimension_numbers<[1], [0], [0], [1], [0, 0, 1, 1], [], []>} : vector<8x8xf32>, vector<8x324xf32>, vector<8x324xf32> -> vector<8x324xf32>
    %110 = arith.addf %105, %109 : vector<8x324xf32>
    %c2_130 = arith.constant 2 : index
    %c2_131 = arith.constant 2 : index
    %c0_132 = arith.constant 0 : index
    %c0_133 = arith.constant 0 : index
    %111 = vector.load %arg3[%c2_130, %c2_131, %c0_132, %c0_133] : memref<3x3x8x8xf32, #tpu.memory_space<vmem>>, vector<1x1x8x8xf32>
    %112 = vector.shape_cast %111 : vector<1x1x8x8xf32> to vector<8x8xf32>
    %c0_134 = arith.constant 0 : index
    %c38_135 = arith.constant 38 : index
    %113 = vector.load %arg11[%c0_134, %c38_135] : memref<8x362xf32, #tpu.memory_space<vmem>>, vector<8x324xf32>
    %cst_136 = arith.constant dense<0.000000e+00> : vector<8x324xf32>
    %114 = tpu.matmul %112, %113, %cst_136 {dimension_numbers = #tpu.dot_dimension_numbers<[1], [0], [0], [1], [0, 0, 1, 1], [], []>} : vector<8x8xf32>, vector<8x324xf32>, vector<8x324xf32> -> vector<8x324xf32>
    %115 = arith.addf %110, %114 : vector<8x324xf32>
    %c0_137 = arith.constant 0 : index
    %c0_138 = arith.constant 0 : index
    %116 = vector.load %arg9[%c0_137, %c0_138] : memref<8x1xf32, #tpu.memory_space<vmem>>, vector<8x1xf32>
    %117 = vector.broadcast %116 : vector<8x1xf32> to vector<8x324xf32>
    %118 = arith.addf %115, %117 : vector<8x324xf32>
    %c0_139 = arith.constant 0 : index
    %c19_140 = arith.constant 19 : index
    %119 = vector.load %arg11[%c0_139, %c19_140] : memref<8x362xf32, #tpu.memory_space<vmem>>, vector<8x324xf32>
    tpu.vector_store %arg11[%c0_139, %c19_140], %118 {strides = array<i32>} : memref<8x362xf32, #tpu.memory_space<vmem>>, vector<8x324xf32>,
    %c0_141 = arith.constant 0 : index
    %c0_142 = arith.constant 0 : index
    %120 = vector.load %arg11[%c0_141, %c0_142] : memref<8x362xf32, #tpu.memory_space<vmem>>, vector<8x324xf32>
    %121 = arith.addf %120, %4 : vector<8x324xf32>
    %c0_143 = arith.constant 0 : index
    %c0_144 = arith.constant 0 : index
    %c0_145 = arith.constant 0 : index
    %122 = vector.load %arg10[%c0_143, %c0_144, %c0_145] : memref<1x8x324xf32, #tpu.memory_space<vmem>>, vector<1x8x324xf32>
    %123 = vector.shape_cast %122 : vector<1x8x324xf32> to vector<8x324xf32>
    %124 = vector.shape_cast %121 : vector<8x324xf32> to vector<1x8x324xf32>
    tpu.vector_store %arg10[%c0_143, %c0_144, %c0_145], %124 {strides = array<i32>} : memref<1x8x324xf32, #tpu.memory_space<vmem>>, vector<1x8x324xf32>,
    return
  }
  func.func @transform_0(%arg0: i32) -> (i32, i32, i32) {
    %c0_i32 = arith.constant 0 : i32
    %c0_i32_0 = arith.constant 0 : i32
    %c0_i32_1 = arith.constant 0 : i32
    return %arg0, %c0_i32, %c0_i32_0 : i32, i32, i32
  }
  func.func @transform_1(%arg0: i32) -> (i32, i32, i32, i32) {
    %c0_i32 = arith.constant 0 : i32
    %c0_i32_0 = arith.constant 0 : i32
    %c0_i32_1 = arith.constant 0 : i32
    %c0_i32_2 = arith.constant 0 : i32
    %c0_i32_3 = arith.constant 0 : i32
    return %c0_i32, %c0_i32_0, %c0_i32_1, %c0_i32_2 : i32, i32, i32, i32
  }
  func.func @transform_2(%arg0: i32) -> (i32, i32, i32, i32) {
    %c0_i32 = arith.constant 0 : i32
    %c0_i32_0 = arith.constant 0 : i32
    %c0_i32_1 = arith.constant 0 : i32
    %c0_i32_2 = arith.constant 0 : i32
    %c0_i32_3 = arith.constant 0 : i32
    return %c0_i32, %c0_i32_0, %c0_i32_1, %c0_i32_2 : i32, i32, i32, i32
  }
  func.func @transform_3(%arg0: i32) -> (i32, i32) {
    %c0_i32 = arith.constant 0 : i32
    %c0_i32_0 = arith.constant 0 : i32
    %c0_i32_1 = arith.constant 0 : i32
    return %c0_i32, %c0_i32_0 : i32, i32
  }
  func.func @transform_4(%arg0: i32) -> (i32, i32) {
    %c0_i32 = arith.constant 0 : i32
    %c0_i32_0 = arith.constant 0 : i32
    %c0_i32_1 = arith.constant 0 : i32
    return %c0_i32, %c0_i32_0 : i32, i32
  }
  func.func @transform_5(%arg0: i32) -> (i32, i32) {
    %c0_i32 = arith.constant 0 : i32
    %c0_i32_0 = arith.constant 0 : i32
    %c0_i32_1 = arith.constant 0 : i32
    return %c0_i32, %c0_i32_0 : i32, i32
  }
  func.func @transform_6(%arg0: i32) -> (i32, i32) {
    %c0_i32 = arith.constant 0 : i32
    %c0_i32_0 = arith.constant 0 : i32
    %c0_i32_1 = arith.constant 0 : i32
    return %c0_i32, %c0_i32_0 : i32, i32
  }
  func.func @transform_7(%arg0: i32) -> (i32, i32) {
    %c0_i32 = arith.constant 0 : i32
    %c0_i32_0 = arith.constant 0 : i32
    %c0_i32_1 = arith.constant 0 : i32
    return %c0_i32, %c0_i32_0 : i32, i32
  }
  func.func @transform_8(%arg0: i32) -> (i32, i32) {
    %c0_i32 = arith.constant 0 : i32
    %c0_i32_0 = arith.constant 0 : i32
    %c0_i32_1 = arith.constant 0 : i32
    return %c0_i32, %c0_i32_0 : i32, i32
  }
  func.func @transform_9(%arg0: i32) -> (i32, i32, i32) {
    %c0_i32 = arith.constant 0 : i32
    %c0_i32_0 = arith.constant 0 : i32
    %c0_i32_1 = arith.constant 0 : i32
    return %arg0, %c0_i32, %c0_i32_0 : i32, i32, i32
  }
}

</mosaic_0001>

<bundles_post_ra>
// kernel: tpu_custom_call.1
= control target key start
LH: loop header
LB: loop body
LE: loop exit
PB: predicated region body
PF: predicated region fallthrough
CT: control target
= control target key end

     0   :  { %14 = vsyncpa [#allocation4], 0  ;;  %s3725_s0 = inlined_call_operand.vmem [shape: f32[1,8,324], index: 0, kind: input, shape index: {}]   ;;  %s3726_s1 = inlined_call_operand.hbm [shape: f32[3,3,8,8], index: 1, kind: input, shape index: {}]   ;;  %s3727_s2 = inlined_call_operand.hbm [shape: f32[3,3,8,8], index: 2, kind: input, shape index: {}]   ;;  %s3728_s3 = inlined_call_operand.vmem [shape: f32[8,1], index: 3, kind: input, shape index: {}]   ;;  %s3729_s4 = inlined_call_operand.vmem [shape: f32[8,324], index: 4, kind: input, shape index: {}]   ;;  %s3730_s5 = inlined_call_operand.vmem [shape: f32[8,1], index: 5, kind: input, shape index: {}]   ;;  %s3731_s6 = inlined_call_operand.vmem [shape: f32[8,1], index: 6, kind: input, shape index: {}]   ;;  %s3732_s7 = inlined_call_operand.vmem [shape: f32[1,324], index: 7, kind: input, shape index: {}]   ;;  %s3733_s8 = inlined_call_operand.vmem [shape: f32[8,1], index: 8, kind: input, shape index: {}]   ;;  %s3734_s9 = inlined_call_operand.hbm [shape: f32[1,8,324], index: 9, kind: output, shape index: {}]  }
   0x1   :  { %15 = vsyncpa [#allocation7], 0 }
   0x2   :  { %16 = vsyncpa [#allocation5], 0  ;;  %s3357_s30 = smov [#allocation3]   ;;  %s3285_s13 = scalar_lea.hbm %s3726_s1, 1152 }
   0x3   :  { %s24_s10 = sshll.u32 %s3357_s30, 4  ;;  %p3286_p0 = scmp.ne.s32.totalorder %s3726_s1, %s3285_s13  ;;  %s25_s10 = int_to_ptr.vmem [resolvable:$true] %s24_s10 }
   0x4   :  { %p3289_p1 = scmp.lt.u32.totalorder %s3285_s13, %s3726_s1 }
   0x6   :  { %p3291_p2 = pnand %p3289_p1, %p3286_p0 }
   0x8   :  { %3294 = shalt.err (!%p3291_p2)
}
   0x9   :  { %s3295_s18 = scalar_lea.vmem %s25_s10, 1152  ;;  %p3300_p4 = scmp.lt.s32.totalorder %s25_s10, %s25_s10 }
   0xa   :  { %p3296_p3 = scmp.ne.s32.totalorder %s25_s10, %s3295_s18  ;;  %p3301_p5 = scmp.lt.s32.totalorder %s3295_s18, %s3295_s18 }
   0xc   :  { %p3302_p6 = por %p3301_p5, %p3300_p4 }
   0xe   :  { %p3303_p7 = pnand %p3302_p6, %p3296_p3 }
  0x10   :  { %3306 = shalt.err (!%p3303_p7)
}
  0x11   :  { %s3358_s19 = smov 128   ;;  %s3359_s20 = smov 8  }
  0x12   :  { %30 = dma.hbm_to_vmem [thread:$0]  %s3726_s1, 1152, %s25_s10, [#allocation4], %s3358_s19, %s3358_s19, %s3359_s20  }
  0x13   :  { %s3360_s23 = smov [#allocation6]   ;;  %s3307_s27 = scalar_lea.hbm %s3727_s2, 1152 }
  0x14   :  { %s36_s24 = sshll.u32 %s3360_s23, 4  ;;  %p3308_p8 = scmp.ne.s32.totalorder %s3727_s2, %s3307_s27  ;;  %s37_s24 = int_to_ptr.vmem [resolvable:$true] %s36_s24 }
  0x15   :  { %p3311_p9 = scmp.lt.u32.totalorder %s3307_s27, %s3727_s2 }
  0x17   :  { %p3313_p10 = pnand %p3311_p9, %p3308_p8 }
  0x19   :  { %3316 = shalt.err (!%p3313_p10)
}
  0x1a   :  { %s3317_s12 = scalar_lea.vmem %s37_s24, 1152  ;;  %p3322_p12 = scmp.lt.s32.totalorder %s37_s24, %s37_s24 }
  0x1b   :  { %p3318_p11 = scmp.ne.s32.totalorder %s37_s24, %s3317_s12  ;;  %p3323_p13 = scmp.lt.s32.totalorder %s3317_s12, %s3317_s12 }
  0x1d   :  { %p3324_p0 = por %p3323_p13, %p3322_p12 }
  0x1f   :  { %p3325_p1 = pnand %p3324_p0, %p3318_p11 }
  0x21   :  { %3328 = shalt.err (!%p3325_p1)
}
  0x22   :  { %42 = dma.hbm_to_vmem [thread:$0]  %s3727_s2, 1152, %s37_s24, [#allocation7], %s3358_s19, %s3358_s19, %s3359_s20  }
  0x23   :  { %3351 = dma.done.wait [#allocation4], 1152  }
  0x24   :  { %3352 = vsyncadd [#allocation4], 4294966144 }
  0x25   :  { %3353 = dma.done.wait [#allocation7], 1152  }
  0x26   :  { %3354 = vsyncadd [#allocation7], 4294966144  ;;  %vm67_vm0 = vcmask 867328   ;;  %v3361_v0 = vmov 0   ;;  %v3362_v1 = vmov 0.0   ;;  %v72_v2 = vld [vmem:[%s3728_s3] sm:$0xff] }
  0x27   :  { %3283 = vset.pattern.permute.xlu0 %v3361_v0  ;;  %68 = vst.msk [vmem:[#allocation2 + $0x10] sm:$0xff] %vm67_vm0, %v3362_v1  ;;  %3144 = vmatprep.subr.mxu1 %v3362_v1  ;;  %v3459_v3 = vld [vmem:[%s3725_s0] sm:$0xff]  ;;  %v3464_v4 = vld [vmem:[%s3725_s0 + $0x8] sm:$0xff]  ;;  %v3469_v5 = vld [vmem:[%s3725_s0 + $0x10] sm:$0xff]  ;;  %vm3363_vm1 = vmmov 0   ;;  %vm3735_vm2 = vcmask 556032  }
  0x28   :  { %180 = vmatprep.mubr.f32.mxu0 %v3362_v1  ;;  %3284 = vset.pattern.permute.xlu1 %v3361_v0  ;;  %v81_v6 = vld [vmem:[%s3729_s4] sm:$0xff]  ;;  %v82_v7 = vld [vmem:[%s3729_s4 + $0x8] sm:$0xff]  ;;  %v83_v8 = vld [vmem:[%s3729_s4 + $0x10] sm:$0xff]  ;;  %s3364_s0 = smov 127   ;;  %s3365_s4 = smov 126   ;;  %vm106_vm3 = vcmask 1039360  }
  0x29   :  { %75 = vperm.xlu0 %3283, %v72_v2   ;;  %3146 = vmatprep.mubr.msk.f32.mxu1 %vm3363_vm1, %v3362_v1  ;;  %s3366_s25 = smov 110   ;;  %s3367_s26 = smov 109   ;;  %v1540_v17 = vld [vmem:[%s3731_s6] sm:$0xff]  ;;  %vm112_vm4 = vcmask 64512   ;;  %v91_v28 = vld [vmem:[#allocation3] sm:$0xff]  ;;  %vm409_vm5 = vcmask 1031168  }
  0x2a   :  { %s3368_s27 = smov 108   ;;  %s3369_s28 = smov 92   ;;  %v1528_v18 = vld [vmem:[%s3730_s5] sm:$0xff]  ;;  %v402_v32 = vld [vmem:[#allocation3 + $0x10] sm:$0xff]  ;;  %vm570_vm6 = vcmask 900096   ;;  %v563_v35 = vld [vmem:[#allocation3 + $0x18] sm:$0xff] }
  0x2b   :  { %s3370_s29 = smov 91   ;;  %s3371_s30 = smov 90   ;;  %v96_v22 = vld [vmem:[#allocation3 + $0x8] sm:$0xff]  ;;  %v724_v40 = vld [vmem:[#allocation3 + $0x20] sm:$0xff]  ;;  %vm731_vm7 = vcmask 891904   ;;  %vm892_vm8 = vcmask 883712  }
  0x2c   :  { %v885_v44 = vld [vmem:[#allocation3 + $0x28] sm:$0xff]  ;;  %v1046_v50 = vld [vmem:[#allocation3 + $0x30] sm:$0xff]  ;;  %v1207_v54 = vld [vmem:[#allocation3 + $0x38] sm:$0xff]  ;;  %vm1053_vm9 = vcmask 752640   ;;  %vm1214_vm10 = vcmask 744448   ;;  %vm3736_vm11 = vcmask 736256  }
  0x2d   :  { %v1368_v59 = vld [vmem:[#allocation3 + $0x40] sm:$0xff] }
  0xa8   :  { %v76_v9 = vpop.permute.xlu0 %75 }
  0xa9   :  { %v78_v10 = vmul.f32 %v76_v9, %v3459_v3  ;;  %v79_v11 = vmul.f32 %v76_v9, %v3464_v4  ;;  %v80_v12 = vmul.f32 %v76_v9, %v3469_v5 }
  0xab   :  { %v3485_v13 = vadd.f32 %v81_v6, %v78_v10  ;;  %v85_v14 = vadd.f32 %v82_v7, %v79_v11  ;;  %v86_v15 = vadd.f32 %v83_v8, %v80_v12 }
  0xad   :  { %87 = vst [vmem:[#allocation2] sm:$0xff] %v3485_v13  ;;  %90 = vst.msk [vmem:[#allocation2 + $0x10] sm:$0xff] %vm3735_vm2, %v86_v15  ;;  %102 = vrot.lane.b32.xlu0 %v85_v14, %s3364_s0 }
  0xb1   :  { %405 = vrot.lane.b32.xlu0 %v85_v14, %s3365_s4 }
  0xb4   :  { %v94_v16 = vld [vmem:[#allocation2 + $0x10] sm:$0xff] }
  0xb5   :  { %104 = vrot.lane.b32.xlu1 %v94_v16, %s3364_s0  ;;  %403 = vrot.lane.b32.xlu0 %v3485_v13, %s3365_s4 }
  0xb9   :  { %100 = vrot.lane.b32.xlu1 %v3485_v13, %s3364_s0  ;;  %568 = vrot.lane.b32.xlu0 %v94_v16, %s3366_s25 }
  0xbd   :  { %407 = vrot.lane.b32.xlu1 %v94_v16, %s3365_s4  ;;  %727 = vrot.lane.b32.xlu0 %v85_v14, %s3367_s26 }
  0xc1   :  { %566 = vrot.lane.b32.xlu1 %v85_v14, %s3366_s25  ;;  %725 = vrot.lane.b32.xlu0 %v3485_v13, %s3367_s26 }
  0xc5   :  { %564 = vrot.lane.b32.xlu1 %v3485_v13, %s3366_s25  ;;  %890 = vrot.lane.b32.xlu0 %v94_v16, %s3368_s27 }
  0xc9   :  { %729 = vrot.lane.b32.xlu1 %v94_v16, %s3367_s26  ;;  %1049 = vrot.lane.b32.xlu0 %v85_v14, %s3369_s28 }
  0xcd   :  { %888 = vrot.lane.b32.xlu1 %v85_v14, %s3368_s27  ;;  %1047 = vrot.lane.b32.xlu0 %v3485_v13, %s3369_s28 }
  0xd1   :  { %886 = vrot.lane.b32.xlu1 %v3485_v13, %s3368_s27  ;;  %1212 = vrot.lane.b32.xlu0 %v94_v16, %s3370_s29 }
  0xd5   :  { %1051 = vrot.lane.b32.xlu1 %v94_v16, %s3369_s28  ;;  %1371 = vrot.lane.b32.xlu0 %v85_v14, %s3371_s30 }
  0xd9   :  { %1210 = vrot.lane.b32.xlu1 %v85_v14, %s3370_s29  ;;  %1369 = vrot.lane.b32.xlu0 %v3485_v13, %s3371_s30 }
  0xdd   :  { %1208 = vrot.lane.b32.xlu1 %v3485_v13, %s3370_s29  ;;  %1543 = vperm.xlu0 %3283, %v1540_v17  }
  0xe1   :  { %1373 = vrot.lane.b32.xlu1 %v94_v16, %s3371_s30 }
  0xe5   :  { %1531 = vperm.xlu1 %3284, %v1528_v18  }
 0x11f   :  { %v103_v19 = vpop.permute.xlu0 %102 }
 0x123   :  { %v406_v20 = vpop.permute.xlu0 %405 }
 0x127   :  { %v105_v21 = vpop.permute.xlu1 %104  ;;  %v404_v23 = vpop.permute.xlu0 %403 }
 0x128   :  { %3145 = vmatpush3.msra.mxu1 %v105_v21  ;;  %v108_v24 = vsel %vm106_vm3, %v103_v19, %v105_v21  ;;  %v410_v36 = vsel %vm409_vm5, %v404_v23, %v406_v20 }
 0x129   :  { %116 = vmatprep.subr.mxu0 %v108_v24  ;;  %3149 = vmatprep.subr.mxu1 %v3362_v1 }
 0x12a   :  { %3147 = vmatmul.mubr.msk.f32.vlgmr.msra.gmra.mrb[0].mxu1 %vm112_vm4, %v96_v22 }
 0x12b   :  { %3150 = vmatpush3.msra.mxu1 %v94_v16  ;;  %v101_v25 = vpop.permute.xlu1 %100  ;;  %3151 = vmatprep.mubr.msk.f32.mxu1 %vm3363_vm1, %v3362_v1  ;;  %v569_v26 = vpop.permute.xlu0 %568 }
 0x12c   :  { %v107_v27 = vsel %vm106_vm3, %v101_v25, %v103_v19  ;;  %3154 = vmatprep.subr.mxu1 %v3362_v1 }
 0x12d   :  { %117 = vmatpush1.msra.mxu0 %v107_v27 }
 0x12e   :  { %3072 = vmatmul.mubr.msk.f32.vlgmr.msra.gmra.mrb[0].mxu0 %vm112_vm4, %v96_v22  ;;  %260 = vmatprep.subr.mxu0 %v85_v14 }
 0x12f   :  { %261 = vmatpush1.msra.mxu0 %v3485_v13  ;;  %v408_v29 = vpop.permute.xlu1 %407  ;;  %3152 = vmatmul.mubr.msk.f32.vlgmr.msra.gmra.mrb[2].mxu1 %vm112_vm4, %v91_v28  ;;  %v728_v30 = vpop.permute.xlu0 %727 }
 0x130   :  { %3155 = vmatpush3.msra.mxu1 %v408_v29  ;;  %v411_v31 = vsel %vm409_vm5, %v406_v20, %v408_v29  ;;  %3156 = vmatprep.mubr.msk.f32.mxu1 %vm3363_vm1, %v3362_v1  ;;  %v1555_v29 = vlaneseq }
 0x131   :  { %418 = vmatprep.subr.mxu0 %v411_v31  ;;  %3159 = vmatprep.subr.mxu1 %v3362_v1 }
 0x132   :  { %324 = vmatprep.mubr.f32.mxu0 %v3362_v1 }
 0x133   :  { %v567_v33 = vpop.permute.xlu1 %566  ;;  %3157 = vmatmul.mubr.msk.f32.vlgmr.msra.gmra.mrb[4].mxu1 %vm112_vm4, %v402_v32  ;;  %v726_v34 = vpop.permute.xlu0 %725 }
 0x134   :  { %3160 = vmatpush3.msra.mxu1 %v569_v26  ;;  %3161 = vmatprep.mubr.msk.f32.mxu1 %vm3363_vm1, %v3362_v1  ;;  %v572_v37 = vsel %vm570_vm6, %v567_v33, %v569_v26  ;;  %v732_v49 = vsel %vm731_vm7, %v726_v34, %v728_v30  ;;  %v1556_v34 = vshrl.u32 %v1555_v29, 7 }
 0x135   :  { %3164 = vmatprep.subr.mxu1 %v3362_v1 }
 0x136   :  { %3074 = vmatmul.mubr.msk.f32.vlgmr.msra.gmra.mrb[0].mxu0 %vm112_vm4, %v91_v28 }
 0x137   :  { %419 = vmatpush1.msra.mxu0 %v410_v36  ;;  %v565_v38 = vpop.permute.xlu1 %564  ;;  %3162 = vmatmul.mubr.msk.f32.vlgmr.msra.gmra.mrb[6].mxu1 %vm112_vm4, %v563_v35  ;;  %v891_v39 = vpop.permute.xlu0 %890 }
 0x138   :  { %579 = vmatprep.subr.mxu0 %v572_v37  ;;  %482 = vmatprep.mubr.f32.mxu0 %v3362_v1  ;;  %v571_v43 = vsel %vm570_vm6, %v565_v38, %v567_v33 }
 0x139   :  { %3166 = vmatprep.mubr.msk.f32.mxu1 %vm3363_vm1, %v3362_v1 }
 0x13b   :  { %v730_v41 = vpop.permute.xlu1 %729  ;;  %v1050_v42 = vpop.permute.xlu0 %1049 }
 0x13c   :  { %3165 = vmatpush3.msra.mxu1 %v730_v41  ;;  %v733_v45 = vsel %vm731_vm7, %v728_v30, %v730_v41  ;;  %v1552_v30 = vld [vmem:[%s3732_s7] sm:$0x7]  ;;  %s3372_s7 = smov 19  }
 0x13d   :  { %3169 = vmatprep.subr.mxu1 %v3362_v1  ;;  %3167 = vmatmul.mubr.msk.f32.vlgmr.msra.gmra.mrb[8].mxu1 %vm112_vm4, %v724_v40  ;;  %vm1553_vm12 = vcmp.gt.f32.partialorder %v1552_v30, 0.5  ;;  %v2222_v30 = vld [vmem:[#allocation6 + $0x20] sm:$0xff] }
 0x13e   :  { %3076 = vmatmul.mubr.msk.f32.vlgmr.msra.gmra.mrb[0].mxu0 %vm112_vm4, %v402_v32  ;;  %3170 = vmatpush3.msra.mxu1 %v891_v39  ;;  %v1554_v36 = vsel %vm1553_vm12, 1, %v3361_v0 }
 0x13f   :  { %580 = vmatpush1.msra.mxu0 %v571_v43  ;;  %v889_v46 = vpop.permute.xlu1 %888  ;;  %643 = vmatprep.mubr.f32.mxu0 %v3362_v1  ;;  %v1048_v48 = vpop.permute.xlu0 %1047 }
 0x140   :  { %740 = vmatprep.subr.mxu0 %v733_v45  ;;  %3171 = vmatprep.mubr.msk.f32.mxu1 %vm3363_vm1, %v3362_v1  ;;  %v894_v51 = vsel %vm892_vm8, %v889_v46, %v891_v39  ;;  %v1054_v61 = vsel %vm1053_vm9, %v1048_v48, %v1050_v42  ;;  %v1561_v48 = vsub.s32 1, %v1556_v34 }
 0x141   :  { %3174 = vmatprep.subr.mxu1 %v3362_v1  ;;  %3172 = vmatmul.mubr.msk.f32.vlgmr.msra.gmra.mrb[10].mxu1 %vm112_vm4, %v885_v44 }
 0x142   :  { %3176 = vmatprep.mubr.msk.f32.mxu1 %vm3363_vm1, %v3362_v1 }
 0x143   :  { %v887_v47 = vpop.permute.xlu1 %886  ;;  %v1213_v53 = vpop.permute.xlu0 %1212 }
 0x144   :  { %v893_v56 = vsel %vm892_vm8, %v887_v47, %v889_v46  ;;  %v1557_v47 = vsub.s32 0, %v1556_v34 }
 0x146   :  { %3078 = vmatmul.mubr.msk.f32.vlgmr.msra.gmra.mrb[0].mxu0 %vm112_vm4, %v563_v35  ;;  %v1565_v35 = vsub.s32 2, %v1556_v34 }
 0x147   :  { %741 = vmatpush1.msra.mxu0 %v732_v49  ;;  %v1052_v52 = vpop.permute.xlu1 %1051  ;;  %804 = vmatprep.mubr.f32.mxu0 %v3362_v1  ;;  %v1372_v63 = vpop.permute.xlu0 %1371  ;;  %v1558_v49 = vrot.slane %v1554_v36, %v1557_v47 }
 0x148   :  { %901 = vmatprep.subr.mxu0 %v894_v51  ;;  %3175 = vmatpush3.msra.mxu1 %v1052_v52  ;;  %v1055_v57 = vsel %vm1053_vm9, %v1050_v42, %v1052_v52  ;;  %v1566_v41 = vrot.slane %v1554_v36, %v1565_v35  ;;  %v1562_v51 = vrot.slane %v1554_v36, %v1561_v48  ;;  %v2382_v35 = vld [vmem:[#allocation6 + $0x28] sm:$0xff] }
 0x149   :  { %3179 = vmatprep.subr.mxu1 %v3362_v1  ;;  %3177 = vmatmul.mubr.msk.f32.vlgmr.msra.gmra.mrb[12].mxu1 %vm112_vm4, %v1046_v50  ;;  %vm1567_vm0 = vcmp.eq.s32.totalorder %v1558_v49, 1 }
 0x14a   :  { %3180 = vmatpush3.msra.mxu1 %v1213_v53  ;;  %3181 = vmatprep.mubr.msk.f32.mxu1 %vm3363_vm1, %v3362_v1  ;;  %vm1569_vm14 = vcmp.eq.s32.totalorder %v1566_v41, 1  ;;  %vm1568_vm2 = vcmp.eq.s32.totalorder %v1562_v51, 1 }
 0x14b   :  { %v1211_v55 = vpop.permute.xlu1 %1210  ;;  %3184 = vmatprep.subr.mxu1 %v3362_v1  ;;  %v1370_v7 = vpop.permute.xlu0 %1369 }
 0x14c   :  { %v1216_v62 = vsel %vm1214_vm10, %v1211_v55, %v1213_v53  ;;  %v1376_v8 = vsel %vm3736_vm11, %v1370_v7, %v1372_v63 }
 0x14d   :  { %3182 = vmatmul.mubr.msk.f32.vlgmr.msra.gmra.mrb[14].mxu1 %vm112_vm4, %v1207_v54 }
 0x14e   :  { %3080 = vmatmul.mubr.msk.f32.vlgmr.msra.gmra.mrb[0].mxu0 %vm112_vm4, %v724_v40  ;;  %3186 = vmatprep.mubr.msk.f32.mxu1 %vm3363_vm1, %v3362_v1 }
 0x14f   :  { %902 = vmatpush1.msra.mxu0 %v893_v56  ;;  %v1209_v58 = vpop.permute.xlu1 %1208  ;;  %965 = vmatprep.mubr.f32.mxu0 %v3362_v1 }
 0x150   :  { %1062 = vmatprep.subr.mxu0 %v1055_v57  ;;  %v1215_v2 = vsel %vm1214_vm10, %v1209_v58, %v1211_v55 }
 0x153   :  { %v1374_v60 = vpop.permute.xlu1 %1373 }
 0x154   :  { %3185 = vmatpush3.msra.mxu1 %v1374_v60  ;;  %v1377_v6 = vsel %vm3736_vm11, %v1372_v63, %v1374_v60  ;;  %vm1591_vm11 = vcmask 711680  }
 0x155   :  { %3187 = vmatmul.mubr.msk.f32.vlgmr.msra.gmra.mrb[16].mxu1 %vm112_vm4, %v1368_v59  ;;  %3189 = vmatprep.subr.mxu1 %v3362_v1 }
 0x156   :  { %3082 = vmatmul.mubr.msk.f32.vlgmr.msra.gmra.mrb[0].mxu0 %vm112_vm4, %v885_v44  ;;  %3191 = vmatprep.mubr.msk.f32.mxu1 %vm3363_vm1, %v3362_v1 }
 0x157   :  { %1063 = vmatpush1.msra.mxu0 %v1054_v61  ;;  %1126 = vmatprep.mubr.f32.mxu0 %v3362_v1 }
 0x158   :  { %1223 = vmatprep.subr.mxu0 %v1216_v62 }
 0x15c   :  { %v1544_v43 = vpop.permute.xlu0 %1543 }
 0x15e   :  { %3084 = vmatmul.mubr.msk.f32.vlgmr.msra.gmra.mrb[0].mxu0 %vm112_vm4, %v1046_v50 }
 0x15f   :  { %1224 = vmatpush1.msra.mxu0 %v1215_v2  ;;  %1287 = vmatprep.mubr.f32.mxu0 %v3362_v1 }
 0x160   :  { %1384 = vmatprep.subr.mxu0 %v1377_v6 }
 0x164   :  { %v1532_v38 = vpop.permute.xlu1 %1531 }
 0x166   :  { %3086 = vmatmul.mubr.msk.f32.vlgmr.msra.gmra.mrb[0].mxu0 %vm112_vm4, %v1207_v54 }
 0x167   :  { %1385 = vmatpush1.msra.mxu0 %v1376_v8  ;;  %1448 = vmatprep.mubr.f32.mxu0 %v3362_v1  ;;  %v3021_v8 = vld [vmem:[%s3733_s8] sm:$0xff]  ;;  %s3373_s8 = smov [#allocation8]  }
 0x168   :  { %s3062_s2 = sshll.u32 %s3373_s8, 4  ;;  %s3063_s2 = int_to_ptr.vmem [resolvable:$true] %s3062_s2 }
 0x169   :  { %s3329_s15 = scalar_lea.vmem %s3063_s2, 384  ;;  %p3334_p3 = scmp.lt.s32.totalorder %s3063_s2, %s3063_s2 }
 0x16a   :  { %p3330_p2 = scmp.ne.s32.totalorder %s3063_s2, %s3329_s15  ;;  %p3335_p4 = scmp.lt.s32.totalorder %s3329_s15, %s3329_s15 }
 0x16c   :  { %p3336_p5 = por %p3335_p4, %p3334_p3 }
 0x16e   :  { %3088 = vmatmul.mubr.msk.f32.vlgmr.msra.gmra.mrb[0].mxu0 %vm112_vm4, %v1368_v59  ;;  %p3337_p6 = pnand %p3336_p5, %p3330_p2 }
 0x16f   :  { %1680 = vmatprep.mubr.f32.mxu0 %v3362_v1 }
 0x1fd   :  { %v253_v9 = vpop.f32.mrb[0].mxu1 }
 0x1fe   :  { %v3148_v10 = vpop.f32.mrb[1].mxu1 }
 0x202   :  { %v397_v11 = vpop.f32.mrb[2].mxu1 }
 0x203   :  { %v398_v12 = vadd.f32 %v397_v11, %v253_v9  ;;  %v3153_v13 = vpop.f32.mrb[3].mxu1  ;;  %v1598_v11 = vld [vmem:[#allocation6 + $0x8] sm:$0xff] }
 0x206   :  { %v555_v14 = vpop.f32.mrb[4].mxu1 }
 0x207   :  { %v561_v15 = vadd.f32 %v555_v14, %v398_v12  ;;  %v3158_v16 = vpop.f32.mrb[5].mxu1 }
 0x20a   :  { %v716_v17 = vpop.f32.mrb[6].mxu1 }
 0x20b   :  { %v722_v18 = vadd.f32 %v716_v17, %v561_v15  ;;  %v3163_v19 = vpop.f32.mrb[7].mxu1  ;;  %v1593_v17 = vld [vmem:[#allocation6] sm:$0xff] }
 0x210   :  { %v877_v20 = vpop.f32.mrb[8].mxu1 }
 0x211   :  { %v883_v21 = vadd.f32 %v877_v20, %v722_v18  ;;  %v3168_v22 = vpop.f32.mrb[9].mxu1 }
 0x212   :  { %v1902_v22 = vld [vmem:[#allocation6 + $0x10] sm:$0xff] }
 0x214   :  { %v1038_v23 = vpop.f32.mrb[10].mxu1 }
 0x215   :  { %v1044_v24 = vadd.f32 %v1038_v23, %v883_v21  ;;  %v3173_v25 = vpop.f32.mrb[11].mxu1 }
 0x21c   :  { %v1199_v26 = vpop.f32.mrb[12].mxu1 }
 0x21d   :  { %v1205_v27 = vadd.f32 %v1199_v26, %v1044_v24  ;;  %v3178_v28 = vpop.f32.mrb[13].mxu1  ;;  %v2062_v26 = vld [vmem:[#allocation6 + $0x18] sm:$0xff] }
 0x220   :  { %v1360_v31 = vpop.f32.mrb[14].mxu1 }
 0x221   :  { %v1366_v32 = vadd.f32 %v1360_v31, %v1205_v27  ;;  %v3183_v33 = vpop.f32.mrb[15].mxu1 }
 0x228   :  { %v1521_v37 = vpop.f32.mrb[16].mxu1 }
 0x229   :  { %v1527_v39 = vadd.f32 %v1521_v37, %v1366_v32  ;;  %v3188_v40 = vpop.f32.mrb[17].mxu1 }
 0x22b   :  { %v1536_v42 = vadd.f32 %v1532_v38, %v1527_v39 }
 0x22d   :  { %vm1539_vm13 = vcmp.ge.f32.partialorder %v1536_v42, 0.0  ;;  %v1548_v44 = vmul.f32 %v1544_v43, %v1536_v42 }
 0x22f   :  { %v1551_v45 = vsel %vm1539_vm13, %v1536_v42, %v1548_v44  ;;  %vm1588_vm13 = vcmask 1047704  }
 0x230   :  { %v1572_v46 = vsel %vm1569_vm14, %v1551_v45, 0.0  ;;  %vm1582_vm14 = vcmask 154624   ;;  %v2702_v45 = vld [vmem:[#allocation6 + $0x38] sm:$0xff] }
 0x241   :  { %v1450_v50 = vpop.f32.mrb[0].mxu0 }
 0x242   :  { %v1534_v52 = vadd.f32 %v1532_v38, %v1450_v50  ;;  %v1452_v53 = vpop.f32.mrb[1].mxu0  ;;  %v2862_v50 = vld [vmem:[#allocation6 + $0x40] sm:$0xff] }
 0x243   :  { %v1535_v0 = vadd.f32 %v1532_v38, %v1452_v53  ;;  %v2542_v38 = vld [vmem:[#allocation6 + $0x30] sm:$0xff] }
 0x244   :  { %v1546_v54 = vmul.f32 %v1544_v43, %v1534_v52  ;;  %vm1537_vm15 = vcmp.ge.f32.partialorder %v1534_v52, 0.0 }
 0x245   :  { %v1547_v55 = vmul.f32 %v1544_v43, %v1535_v0  ;;  %vm1538_vm12 = vcmp.ge.f32.partialorder %v1535_v0, 0.0 }
 0x246   :  { %v1549_v56 = vsel %vm1537_vm15, %v1534_v52, %v1546_v54 }
 0x247   :  { %v1570_v57 = vsel %vm1567_vm0, %v1549_v56, 0.0  ;;  %v1550_v58 = vsel %vm1538_vm12, %v1535_v0, %v1547_v55 }
 0x248   :  { %1576 = vrot.lane.b32.xlu1 %v1570_v57, %s3372_s7  ;;  %v1571_v59 = vsel %vm1568_vm2, %v1550_v58, 0.0 }
 0x249   :  { %1578 = vrot.lane.b32.xlu0 %v1571_v59, %s3372_s7 }
 0x24c   :  { %1580 = vrot.lane.b32.xlu1 %v1572_v46, %s3372_s7 }
 0x2ba   :  { %v1577_v60 = vpop.permute.xlu1 %1576 }
 0x2bb   :  { %1589 = vst.msk [vmem:[#allocation2] sm:$0xff] %vm1588_vm13, %v1577_v60  ;;  %v1579_v61 = vpop.permute.xlu0 %1578 }
 0x2bc   :  { %v1583_v62 = vsel %vm1582_vm14, %v1577_v60, %v1579_v61 }
 0x2bd   :  { %1604 = vrot.lane.b32.xlu0 %v1583_v62, %s3364_s0 }
 0x2be   :  { %v1581_v63 = vpop.permute.xlu1 %1580 }
 0x2bf   :  { %v1584_v2 = vsel %vm1582_vm14, %v1579_v61, %v1581_v63 }
 0x2c0   :  { %1592 = vst.msk [vmem:[#allocation2 + $0x10] sm:$0xff] %vm1591_vm11, %v1584_v2 }
 0x2c2   :  { %v1594_v6 = vld [vmem:[#allocation2] sm:$0xff] }
 0x2c3   :  { %1602 = vrot.lane.b32.xlu0 %v1594_v6, %s3364_s0 }
 0x2c7   :  { %v1596_v7 = vld [vmem:[#allocation2 + $0x10] sm:$0xff] }
 0x2c8   :  { %1606 = vrot.lane.b32.xlu1 %v1596_v7, %s3364_s0  ;;  %1907 = vrot.lane.b32.xlu0 %v1596_v7, %s3365_s4 }
 0x2cc   :  { %1905 = vrot.lane.b32.xlu1 %v1583_v62, %s3365_s4  ;;  %2065 = vrot.lane.b32.xlu0 %v1583_v62, %s3366_s25 }
 0x2d0   :  { %1903 = vrot.lane.b32.xlu1 %v1594_v6, %s3365_s4  ;;  %2063 = vrot.lane.b32.xlu0 %v1594_v6, %s3366_s25 }
 0x2d4   :  { %2067 = vrot.lane.b32.xlu1 %v1596_v7, %s3366_s25  ;;  %2227 = vrot.lane.b32.xlu0 %v1596_v7, %s3367_s26 }
 0x2d8   :  { %2225 = vrot.lane.b32.xlu1 %v1583_v62, %s3367_s26  ;;  %2385 = vrot.lane.b32.xlu0 %v1583_v62, %s3368_s27 }
 0x2dc   :  { %2223 = vrot.lane.b32.xlu1 %v1594_v6, %s3367_s26  ;;  %2383 = vrot.lane.b32.xlu0 %v1594_v6, %s3368_s27 }
 0x2e0   :  { %2387 = vrot.lane.b32.xlu1 %v1596_v7, %s3368_s27  ;;  %2547 = vrot.lane.b32.xlu0 %v1596_v7, %s3369_s28 }
 0x2e4   :  { %2545 = vrot.lane.b32.xlu1 %v1583_v62, %s3369_s28  ;;  %2705 = vrot.lane.b32.xlu0 %v1583_v62, %s3370_s29 }
 0x2e8   :  { %2543 = vrot.lane.b32.xlu1 %v1594_v6, %s3369_s28  ;;  %2703 = vrot.lane.b32.xlu0 %v1594_v6, %s3370_s29 }
 0x2ec   :  { %2707 = vrot.lane.b32.xlu1 %v1596_v7, %s3370_s29  ;;  %2867 = vrot.lane.b32.xlu0 %v1596_v7, %s3371_s30 }
 0x2f0   :  { %2865 = vrot.lane.b32.xlu1 %v1583_v62, %s3371_s30  ;;  %3024 = vperm.xlu0 %3283, %v3021_v8  }
 0x2f4   :  { %2863 = vrot.lane.b32.xlu1 %v1594_v6, %s3371_s30 }
 0x32f   :  { %v1605_v9 = vpop.permute.xlu0 %1604 }
 0x335   :  { %v1603_v10 = vpop.permute.xlu0 %1602 }
 0x336   :  { %v1608_v15 = vsel %vm106_vm3, %v1603_v10, %v1605_v9 }
 0x33a   :  { %v1607_v12 = vpop.permute.xlu1 %1606  ;;  %v1908_v13 = vpop.permute.xlu0 %1907 }
 0x33b   :  { %3190 = vmatpush3.msra.mxu1 %v1607_v12  ;;  %v1609_v14 = vsel %vm106_vm3, %v1605_v9, %v1607_v12  ;;  %vm3739_vm3 = vcmask 556032  }
 0x33c   :  { %1616 = vmatprep.subr.mxu0 %v1609_v14  ;;  %3192 = vmatmul.mubr.msk.f32.vlgmr.msra.gmra.mrb[18].mxu1 %vm112_vm4, %v1598_v11 }
 0x33d   :  { %3194 = vmatprep.subr.mxu1 %v3362_v1  ;;  %1617 = vmatpush1.msra.mxu0 %v1608_v15 }
 0x33e   :  { %3195 = vmatpush3.msra.mxu1 %v1596_v7  ;;  %3090 = vmatmul.mubr.msk.f32.vlgmr.msra.gmra.mrb[2].mxu0 %vm112_vm4, %v1598_v11  ;;  %v1906_v16 = vpop.permute.xlu1 %1905  ;;  %v2066_v18 = vpop.permute.xlu0 %2065 }
 0x33f   :  { %1760 = vmatprep.subr.mxu0 %v1583_v62  ;;  %3196 = vmatprep.mubr.msk.f32.mxu1 %vm3363_vm1, %v3362_v1  ;;  %v1910_v19 = vsel %vm409_vm5, %v1906_v16, %v1908_v13 }
 0x340   :  { %1761 = vmatpush1.msra.mxu0 %v1594_v6  ;;  %3199 = vmatprep.subr.mxu1 %v3362_v1 }
 0x341   :  { %3197 = vmatmul.mubr.msk.f32.vlgmr.msra.gmra.mrb[20].mxu1 %vm112_vm4, %v1593_v17  ;;  %1917 = vmatprep.subr.mxu0 %v1910_v19 }
 0x342   :  { %3200 = vmatpush3.msra.mxu1 %v1908_v13  ;;  %v1904_v20 = vpop.permute.xlu1 %1903  ;;  %1824 = vmatprep.mubr.f32.mxu0 %v3362_v1  ;;  %v2064_v21 = vpop.permute.xlu0 %2063 }
 0x343   :  { %3201 = vmatprep.mubr.msk.f32.mxu1 %vm3363_vm1, %v3362_v1  ;;  %3204 = vmatprep.subr.mxu1 %v3362_v1  ;;  %v1909_v23 = vsel %vm409_vm5, %v1904_v20, %v1906_v16  ;;  %v2069_v31 = vsel %vm570_vm6, %v2064_v21, %v2066_v18 }
 0x345   :  { %3202 = vmatmul.mubr.msk.f32.vlgmr.msra.gmra.mrb[22].mxu1 %vm112_vm4, %v1902_v22 }
 0x346   :  { %3092 = vmatmul.mubr.msk.f32.vlgmr.msra.gmra.mrb[2].mxu0 %vm112_vm4, %v1593_v17  ;;  %v2068_v24 = vpop.permute.xlu1 %2067  ;;  %v2228_v25 = vpop.permute.xlu0 %2227  ;;  %3206 = vmatprep.mubr.msk.f32.mxu1 %vm3363_vm1, %v3362_v1 }
 0x347   :  { %1918 = vmatpush1.msra.mxu0 %v1909_v23  ;;  %3205 = vmatpush3.msra.mxu1 %v2068_v24  ;;  %v2070_v27 = vsel %vm570_vm6, %v2066_v18, %v2068_v24 }
 0x348   :  { %2077 = vmatprep.subr.mxu0 %v2070_v27  ;;  %3209 = vmatprep.subr.mxu1 %v3362_v1 }
 0x349   :  { %3207 = vmatmul.mubr.msk.f32.vlgmr.msra.gmra.mrb[24].mxu1 %vm112_vm4, %v2062_v26  ;;  %1981 = vmatprep.mubr.f32.mxu0 %v3362_v1 }
 0x34a   :  { %v2226_v28 = vpop.permute.xlu1 %2225  ;;  %3210 = vmatpush3.msra.mxu1 %v2228_v25  ;;  %v2386_v29 = vpop.permute.xlu0 %2385  ;;  %3211 = vmatprep.mubr.msk.f32.mxu1 %vm3363_vm1, %v3362_v1 }
 0x34b   :  { %3214 = vmatprep.subr.mxu1 %v3362_v1  ;;  %v2230_v34 = vsel %vm731_vm7, %v2226_v28, %v2228_v25 }
 0x34d   :  { %3212 = vmatmul.mubr.msk.f32.vlgmr.msra.gmra.mrb[26].mxu1 %vm112_vm4, %v2222_v30 }
 0x34e   :  { %3094 = vmatmul.mubr.msk.f32.vlgmr.msra.gmra.mrb[2].mxu0 %vm112_vm4, %v1902_v22  ;;  %v2224_v32 = vpop.permute.xlu1 %2223  ;;  %v2384_v33 = vpop.permute.xlu0 %2383  ;;  %3216 = vmatprep.mubr.msk.f32.mxu1 %vm3363_vm1, %v3362_v1 }
 0x34f   :  { %2078 = vmatpush1.msra.mxu0 %v2069_v31  ;;  %2141 = vmatprep.mubr.f32.mxu0 %v3362_v1  ;;  %v2229_v39 = vsel %vm731_vm7, %v2224_v32, %v2226_v28  ;;  %v2389_v46 = vsel %vm892_vm8, %v2384_v33, %v2386_v29 }
 0x350   :  { %2237 = vmatprep.subr.mxu0 %v2230_v34 }
 0x352   :  { %v2388_v36 = vpop.permute.xlu1 %2387  ;;  %v2548_v37 = vpop.permute.xlu0 %2547 }
 0x353   :  { %3215 = vmatpush3.msra.mxu1 %v2388_v36  ;;  %v2390_v42 = vsel %vm892_vm8, %v2386_v29, %v2388_v36 }
 0x354   :  { %3219 = vmatprep.subr.mxu1 %v3362_v1  ;;  %3217 = vmatmul.mubr.msk.f32.vlgmr.msra.gmra.mrb[28].mxu1 %vm112_vm4, %v2382_v35 }
 0x355   :  { %3220 = vmatpush3.msra.mxu1 %v2548_v37  ;;  %3221 = vmatprep.mubr.msk.f32.mxu1 %vm3363_vm1, %v3362_v1 }
 0x356   :  { %3096 = vmatmul.mubr.msk.f32.vlgmr.msra.gmra.mrb[2].mxu0 %vm112_vm4, %v2062_v26  ;;  %v2546_v40 = vpop.permute.xlu1 %2545  ;;  %v2706_v41 = vpop.permute.xlu0 %2705  ;;  %3224 = vmatprep.subr.mxu1 %v3362_v1 }
 0x357   :  { %2238 = vmatpush1.msra.mxu0 %v2229_v39  ;;  %2301 = vmatprep.mubr.f32.mxu0 %v3362_v1  ;;  %v2550_v48 = vsel %vm1053_vm9, %v2546_v40, %v2548_v37 }
 0x358   :  { %2397 = vmatprep.subr.mxu0 %v2390_v42  ;;  %3222 = vmatmul.mubr.msk.f32.vlgmr.msra.gmra.mrb[30].mxu1 %vm112_vm4, %v2542_v38 }
 0x359   :  { %3226 = vmatprep.mubr.msk.f32.mxu1 %vm3363_vm1, %v3362_v1 }
 0x35a   :  { %v2544_v43 = vpop.permute.xlu1 %2543  ;;  %v2704_v44 = vpop.permute.xlu0 %2703 }
 0x35b   :  { %v2549_v51 = vsel %vm1053_vm9, %v2544_v43, %v2546_v40  ;;  %v2709_v0 = vsel %vm1214_vm10, %v2704_v44, %v2706_v41 }
 0x35e   :  { %3098 = vmatmul.mubr.msk.f32.vlgmr.msra.gmra.mrb[2].mxu0 %vm112_vm4, %v2222_v30  ;;  %v2708_v47 = vpop.permute.xlu1 %2707  ;;  %v2868_v49 = vpop.permute.xlu0 %2867 }
 0x35f   :  { %2398 = vmatpush1.msra.mxu0 %v2389_v46  ;;  %3225 = vmatpush3.msra.mxu1 %v2708_v47  ;;  %v2710_v52 = vsel %vm1214_vm10, %v2706_v41, %v2708_v47 }
 0x360   :  { %2557 = vmatprep.subr.mxu0 %v2550_v48  ;;  %3227 = vmatmul.mubr.msk.f32.vlgmr.msra.gmra.mrb[32].mxu1 %vm112_vm4, %v2702_v45 }
 0x361   :  { %3229 = vmatprep.subr.mxu1 %v3362_v1  ;;  %3231 = vmatprep.mubr.msk.f32.mxu1 %vm3363_vm1, %v3362_v1  ;;  %vm3737_vm1 = vcmask 736256  }
 0x362   :  { %3230 = vmatpush3.msra.mxu1 %v2868_v49  ;;  %2461 = vmatprep.mubr.f32.mxu0 %v3362_v1  ;;  %v2866_v53 = vpop.permute.xlu1 %2865  ;;  %vm3738_vm2 = vmmov %vm3737_vm1 }
 0x363   :  { %v2870_v54 = vsel %vm3737_vm1, %v2866_v53, %v2868_v49 }
 0x364   :  { %3232 = vmatmul.mubr.msk.f32.vlgmr.msra.gmra.mrb[34].mxu1 %vm112_vm4, %v2862_v50 }
 0x366   :  { %3100 = vmatmul.mubr.msk.f32.vlgmr.msra.gmra.mrb[2].mxu0 %vm112_vm4, %v2382_v35  ;;  %v2864_v55 = vpop.permute.xlu1 %2863 }
 0x367   :  { %2558 = vmatpush1.msra.mxu0 %v2549_v51  ;;  %2621 = vmatprep.mubr.f32.mxu0 %v3362_v1  ;;  %v2869_v56 = vsel %vm3738_vm2, %v2864_v55, %v2866_v53 }
 0x368   :  { %2717 = vmatprep.subr.mxu0 %v2710_v52 }
 0x36e   :  { %3102 = vmatmul.mubr.msk.f32.vlgmr.msra.gmra.mrb[2].mxu0 %vm112_vm4, %v2542_v38 }
 0x36f   :  { %2718 = vmatpush1.msra.mxu0 %v2709_v0  ;;  %2781 = vmatprep.mubr.f32.mxu0 %v3362_v1  ;;  %v3025_v23 = vpop.permute.xlu0 %3024 }
 0x370   :  { %2877 = vmatprep.subr.mxu0 %v2870_v54 }
 0x376   :  { %3104 = vmatmul.mubr.msk.f32.vlgmr.msra.gmra.mrb[2].mxu0 %vm112_vm4, %v2702_v45 }
 0x377   :  { %2878 = vmatpush1.msra.mxu0 %v2869_v56  ;;  %2941 = vmatprep.mubr.f32.mxu0 %v3362_v1 }
 0x37e   :  { %3106 = vmatmul.mubr.msk.f32.vlgmr.msra.gmra.mrb[2].mxu0 %vm112_vm4, %v2862_v50 }
 0x40f   :  { %v1753_v57 = vpop.f32.mrb[18].mxu1 }
 0x410   :  { %v3193_v58 = vpop.f32.mrb[19].mxu1 }
 0x414   :  { %v1897_v59 = vpop.f32.mrb[20].mxu1 }
 0x415   :  { %v1898_v60 = vadd.f32 %v1897_v59, %v1753_v57  ;;  %v3198_v61 = vpop.f32.mrb[21].mxu1 }
 0x418   :  { %v2054_v62 = vpop.f32.mrb[22].mxu1 }
 0x419   :  { %v2060_v63 = vadd.f32 %v2054_v62, %v1898_v60  ;;  %v3203_v2 = vpop.f32.mrb[23].mxu1 }
 0x41c   :  { %v2214_v6 = vpop.f32.mrb[24].mxu1 }
 0x41d   :  { %v2220_v7 = vadd.f32 %v2214_v6, %v2060_v63  ;;  %v3208_v8 = vpop.f32.mrb[25].mxu1 }
 0x420   :  { %v2374_v9 = vpop.f32.mrb[26].mxu1 }
 0x421   :  { %v2380_v10 = vadd.f32 %v2374_v9, %v2220_v7  ;;  %v3213_v11 = vpop.f32.mrb[27].mxu1 }
 0x427   :  { %v2534_v12 = vpop.f32.mrb[28].mxu1 }
 0x428   :  { %v2540_v13 = vadd.f32 %v2534_v12, %v2380_v10  ;;  %v3218_v14 = vpop.f32.mrb[29].mxu1 }
 0x42b   :  { %v2694_v1 = vpop.f32.mrb[30].mxu1 }
 0x42c   :  { %v2700_v15 = vadd.f32 %v2694_v1, %v2540_v13  ;;  %v3223_v16 = vpop.f32.mrb[31].mxu1 }
 0x433   :  { %v2854_v17 = vpop.f32.mrb[32].mxu1 }
 0x434   :  { %v2860_v18 = vadd.f32 %v2854_v17, %v2700_v15  ;;  %v3228_v19 = vpop.f32.mrb[33].mxu1 }
 0x437   :  { %v3014_v20 = vpop.f32.mrb[34].mxu1 }
 0x438   :  { %v3020_v21 = vadd.f32 %v3014_v20, %v2860_v18  ;;  %v3233_v22 = vpop.f32.mrb[35].mxu1 }
 0x43a   :  { %v3029_v28 = vadd.f32 %v3025_v23, %v3020_v21 }
 0x451   :  { %v2943_v24 = vpop.f32.mrb[2].mxu0 }
 0x452   :  { %v3027_v25 = vadd.f32 %v3025_v23, %v2943_v24  ;;  %v2945_v26 = vpop.f32.mrb[3].mxu0 }
 0x453   :  { %v3028_v27 = vadd.f32 %v3025_v23, %v2945_v26 }
 0x454   :  { %3033 = vrot.lane.b32.xlu1 %v3027_v25, %s3372_s7 }
 0x455   :  { %3035 = vrot.lane.b32.xlu0 %v3028_v27, %s3372_s7 }
 0x458   :  { %3037 = vrot.lane.b32.xlu1 %v3029_v28, %s3372_s7 }
 0x4c6   :  { %v3034_v29 = vpop.permute.xlu1 %3033 }
 0x4c7   :  { %3044 = vst.msk [vmem:[#allocation2] sm:$0xff] %vm1588_vm13, %v3034_v29  ;;  %v3036_v30 = vpop.permute.xlu0 %3035 }
 0x4c8   :  { %v3039_v31 = vsel %vm1582_vm14, %v3034_v29, %v3036_v30 }
 0x4c9   :  { %v3051_v32 = vadd.f32 %v3039_v31, %v3464_v4 }
 0x4ca   :  { %v3038_v33 = vpop.permute.xlu1 %3037 }
 0x4cb   :  { %v3040_v34 = vsel %vm1582_vm14, %v3036_v30, %v3038_v33  ;;  %3054 = vst [vmem:[#allocation8 + $0x8] sm:$0xff] %v3051_v32 }
 0x4cc   :  { %3046 = vst.msk [vmem:[#allocation2 + $0x10] sm:$0xff] %vm1591_vm11, %v3040_v34 }
 0x4ce   :  { %v3047_v35 = vld [vmem:[#allocation2] sm:$0xff] }
 0x4cf   :  { %v3050_v36 = vadd.f32 %v3047_v35, %v3459_v3 }
 0x4d1   :  { %3053 = vst [vmem:[#allocation8] sm:$0xff] %v3050_v36 }
 0x4d3   :  { %v3049_v37 = vld [vmem:[#allocation2 + $0x10] sm:$0xff] }
 0x4d4   :  { %v3052_v38 = vadd.f32 %v3049_v37, %v3469_v5 }
 0x4d6   :  { %3055 = vst.msk [vmem:[#allocation8 + $0x10] sm:$0xff] %vm3739_vm3, %v3052_v38 }
 0x4d7   :  { %3340 = shalt.err (!%p3337_p6)
}
 0x4d8   :  { %s3341_s18 = scalar_lea.hbm %s3734_s9, 384 }
 0x4d9   :  { %p3342_p7 = scmp.ne.s32.totalorder %s3734_s9, %s3341_s18  ;;  %p3345_p8 = scmp.lt.u32.totalorder %s3341_s18, %s3734_s9 }
 0x4db   :  { %p3347_p9 = pnand %p3345_p8, %p3342_p7 }
 0x4dd   :  { %3350 = shalt.err (!%p3347_p9)
}
 0x4de   :  { %3065 = dma.vmem_to_hbm [thread:$0]  %s3063_s2, 384, %s3734_s9, [#allocation5]  }
 0x4df   :  { %3355 = dma.done.wait [#allocation5], 384  }
 0x4e0   :  { %3356 = vsyncadd [#allocation5], 4294966912 }
 0x4e1   :  { %3069 = vsyncpa [#allocation4], 1 }
 0x4e2   :  { %3070 = vsyncpa [#allocation7], 1 }
 0x4e3   :  { %3071 = vsyncpa [#allocation5], 1 }

</bundles_post_ra>
